<compile_context>
chip_gen: v7x
topology: tpu7x:2x2x1
jax: 0.10.0
libtpu: 0.0.40
codegen_flags: <defaults>
</compile_context>

<pallas_src>
import jax
import jax.numpy as jnp
from jax.experimental import pallas as pl
from jax.experimental.pallas import tpu as pltpu

_LANES = 128
_SUBLANES = 8
_MAX_TILE_ROWS = 2048  # 2048x128 f32 = 1 MiB per stream per buffer


def _round_up(x, m):
    return ((x + m - 1) // m) * m


def _dice_bce_partial_kernel(n_ref, x_ref, t_ref, out_ref):
    """Per-block partial sums for DiceBCE.

    out lane 0: sum(sigmoid(x)) + sum(t)
    out lane 1: sum(sigmoid(x) * t)
    out lane 2: sum(elementwise BCE)   (PyTorch log clamp at -100)
    """
    i = pl.program_id(0)
    rows, lanes = x_ref.shape

    # Validity mask rebuilt from the flat element index (no HBM mask stream).
    # NOTE: int32 index math limits n to < 2**31 elements.
    row_ids = jax.lax.broadcasted_iota(jnp.int32, (rows, lanes), 0)
    lane_ids = jax.lax.broadcasted_iota(jnp.int32, (rows, lanes), 1)
    elem_idx = i * (rows * lanes) + row_ids * lanes + lane_ids
    mask = elem_idx < n_ref[0]

    x = x_ref[...].astype(jnp.float32)
    t = t_ref[...].astype(jnp.float32)

    p = jax.nn.sigmoid(x)
    # PyTorch F.binary_cross_entropy clamps each log term at -100 (this also
    # reproduces its behaviour when the f32 sigmoid saturates to 0 / 1).
    log_p = jnp.maximum(jnp.log(p), -100.0)
    log_1mp = jnp.maximum(jnp.log(1.0 - p), -100.0)
    bce = -(t * log_p + (1.0 - t) * log_1mp)

    zero = jnp.zeros_like(p)
    # Mask with select (NOT multiply) so garbage in out-of-bounds rows of the
    # last block can never leak NaN/Inf into the sums.
    s_pt = jnp.sum(jnp.where(mask, p + t, zero))
    s_inter = jnp.sum(jnp.where(mask, p * t, zero))
    s_bce = jnp.sum(jnp.where(mask, bce, zero))

    lane = jax.lax.broadcasted_iota(jnp.int32, (1, 1, lanes), 2)
    row = jnp.where(lane == 0, s_pt, 0.0)
    row = jnp.where(lane == 1, s_inter, row)
    row = jnp.where(lane == 2, s_bce, row)
    out_ref[...] = row.astype(jnp.float32)


def dice_bce_loss(inputs, targets, smooth=1.0):
    """inputs: raw logits (any shape/dtype), targets: same shape, in [0, 1]."""
    x = jnp.asarray(inputs).reshape(-1)
    t = jnp.asarray(targets).reshape(-1)
    n = x.shape[0]

    # Pad only when the flattened length is not lane-aligned (rare for NCHW
    # feature maps); aligned inputs reshape with no extra HBM traffic.
    # TODO(synk): fully pad-free ragged tail would need a manual-DMA (pl.ANY) path.
    rem = n % _LANES
    if rem:
        pad = _LANES - rem
        x = jnp.pad(x, (0, pad))
        t = jnp.pad(t, (0, pad))
    x2 = x.reshape(-1, _LANES)
    t2 = t.reshape(-1, _LANES)

    rows = x2.shape[0]
    tile_rows = min(_MAX_TILE_ROWS, _round_up(rows, _SUBLANES))
    num_blocks = pl.cdiv(rows, tile_rows)

    n_arr = jnp.asarray([n], dtype=jnp.int32)

    data_spec = pl.BlockSpec((tile_rows, _LANES), lambda i, n_sm: (i, 0))
    out_spec = pl.BlockSpec((1, 1, _LANES), lambda i, n_sm: (i, 0, 0))

    partials = pl.pallas_call(
        _dice_bce_partial_kernel,
        out_shape=jax.ShapeDtypeStruct((num_blocks, 1, _LANES), jnp.float32),
        grid_spec=pltpu.PrefetchScalarGridSpec(
            num_scalar_prefetch=1,
            grid=(num_blocks,),
            in_specs=[data_spec, data_spec],
            out_specs=out_spec,
        ),
        compiler_params=pltpu.CompilerParams(
            dimension_semantics=("parallel",),
        ),
    )(n_arr, x2, t2)

    sum_pt = jnp.sum(partials[:, 0, 0])
    inter = jnp.sum(partials[:, 0, 1])
    bce_sum = jnp.sum(partials[:, 0, 2])

    smooth = jnp.float32(smooth)
    dice_loss = 1.0 - (2.0 * inter + smooth) / (sum_pt + smooth)
    bce_mean = bce_sum / jnp.float32(n)
    return bce_mean + dice_loss


def _reference(inputs, targets, smooth=1.0):
    p = jax.nn.sigmoid(jnp.asarray(inputs, jnp.float32)).reshape(-1)
    t = jnp.asarray(targets, jnp.float32).reshape(-1)
    inter = jnp.sum(p * t)
    dice = 1.0 - (2.0 * inter + smooth) / (jnp.sum(p) + jnp.sum(t) + smooth)
    log_p = jnp.maximum(jnp.log(p), -100.0)
    log_1mp = jnp.maximum(jnp.log(1.0 - p), -100.0)
    bce = jnp.mean(-(t * log_p + (1.0 - t) * log_1mp))
    return bce + dice


if __name__ == "__main__":
    key = jax.random.PRNGKey(0)
    k1, k2 = jax.random.split(key)
    # NCHW logits and binary targets (same as the PyTorch module's inputs).
    x = jax.random.normal(k1, (2, 4, 16, 16), dtype=jnp.float32)
    y = (jax.random.uniform(k2, (2, 4, 16, 16)) > 0.5).astype(jnp.float32)

    loss = dice_bce_loss(x, y, smooth=1.0)
    jax.block_until_ready(loss)

    ref = _reference(x, y, smooth=1.0)
    assert jnp.allclose(loss, ref, rtol=1e-5, atol=1e-5), (loss, ref)
    print("KERNEL_OK")
</pallas_src>

<mosaic_0001>
module attributes {stable_mosaic.version = 11 : i64} {
  func.func @_dice_bce_partial_kernel(%arg0: i32, %arg1: memref<1xi32, #tpu.memory_space<smem>>, %arg2: memref<16x128xf32, #tpu.memory_space<vmem>>, %arg3: memref<16x128xf32, #tpu.memory_space<vmem>>, %arg4: memref<1x1x128xf32, #tpu.memory_space<vmem>>) attributes {dimension_semantics = [#tpu.dimension_semantics<parallel>], iteration_bounds = array<i64: 1>, scalar_prefetch = 1 : i64, scratch_operands = 0 : i64, tpu.core_type = #tpu.core_type<tc>, window_params = [{transform_indices = @transform_0, window_bounds = array<i64: 16, 128>}, {transform_indices = @transform_1, window_bounds = array<i64: 16, 128>}, {transform_indices = @transform_2, window_bounds = array<i64: 1, 1, 128>}]} {
    %0 = tpu.iota {dimensions = array<i32: 0>} : vector<16x128xi32>
    %1 = tpu.iota {dimensions = array<i32: 1>} : vector<16x128xi32>
    %c2048_i32 = arith.constant 2048 : i32
    %2 = arith.muli %arg0, %c2048_i32 : i32
    %c128_i32 = arith.constant 128 : i32
    %3 = vector.broadcast %c128_i32 : i32 to vector<16x128xi32>
    %4 = arith.muli %0, %3 : vector<16x128xi32>
    %5 = vector.broadcast %2 : i32 to vector<16x128xi32>
    %6 = arith.addi %5, %4 : vector<16x128xi32>
    %7 = arith.addi %6, %1 : vector<16x128xi32>
    %c0 = arith.constant 0 : index
    %8 = memref.load %arg1[%c0] : memref<1xi32, #tpu.memory_space<smem>>
    %9 = vector.broadcast %8 : i32 to vector<16x128xi32>
    %10 = arith.cmpi slt, %7, %9 : vector<16x128xi32>
    %c0_0 = arith.constant 0 : index
    %c0_1 = arith.constant 0 : index
    %11 = vector.load %arg2[%c0_0, %c0_1] : memref<16x128xf32, #tpu.memory_space<vmem>>, vector<16x128xf32>
    %c0_2 = arith.constant 0 : index
    %c0_3 = arith.constant 0 : index
    %12 = vector.load %arg3[%c0_2, %c0_3] : memref<16x128xf32, #tpu.memory_space<vmem>>, vector<16x128xf32>
    %13 = arith.negf %11 : vector<16x128xf32>
    %14 = math.exp %13 : vector<16x128xf32>
    %cst = arith.constant 1.000000e+00 : f32
    %15 = vector.broadcast %cst : f32 to vector<16x128xf32>
    %16 = arith.addf %15, %14 : vector<16x128xf32>
    %17 = arith.divf %15, %16 : vector<16x128xf32>
    %18 = math.log %17 : vector<16x128xf32>
    %cst_4 = arith.constant -1.000000e+02 : f32
    %19 = vector.broadcast %cst_4 : f32 to vector<16x128xf32>
    %20 = arith.maximumf %18, %19 : vector<16x128xf32>
    %cst_5 = arith.constant 1.000000e+00 : f32
    %21 = vector.broadcast %cst_5 : f32 to vector<16x128xf32>
    %22 = arith.subf %21, %17 : vector<16x128xf32>
    %23 = math.log %22 : vector<16x128xf32>
    %cst_6 = arith.constant -1.000000e+02 : f32
    %24 = vector.broadcast %cst_6 : f32 to vector<16x128xf32>
    %25 = arith.maximumf %23, %24 : vector<16x128xf32>
    %26 = arith.mulf %12, %20 : vector<16x128xf32>
    %cst_7 = arith.constant 1.000000e+00 : f32
    %27 = vector.broadcast %cst_7 : f32 to vector<16x128xf32>
    %28 = arith.subf %27, %12 : vector<16x128xf32>
    %29 = arith.mulf %28, %25 : vector<16x128xf32>
    %30 = arith.addf %26, %29 : vector<16x128xf32>
    %cst_8 = arith.constant 0.000000e+00 : f32
    %31 = vector.broadcast %cst_8 : f32 to vector<16x128xf32>
    %32 = arith.subf %31, %30 : vector<16x128xf32>
    %cst_9 = arith.constant 0.000000e+00 : f32
    %33 = vector.broadcast %cst_9 : f32 to vector<16x128xf32>
    %34 = arith.addf %17, %12 : vector<16x128xf32>
    %35 = arith.select %10, %34, %33 : vector<16x128xi1>, vector<16x128xf32>
    %36 = vector.shape_cast %35 : vector<16x128xf32> to vector<1x16x128xf32>
    %cst_10 = arith.constant dense<0.000000e+00> : vector<1xf32>
    %37 = vector.multi_reduction <add>, %36, %cst_10 [1, 2] : vector<1x16x128xf32> to vector<1xf32>
    %38 = vector.shape_cast %37 : vector<1xf32> to vector<1x1x1xf32>
    %39 = vector.extract %38[0, 0, 0] : f32 from vector<1x1x1xf32>
    %40 = arith.mulf %17, %12 : vector<16x128xf32>
    %41 = arith.select %10, %40, %33 : vector<16x128xi1>, vector<16x128xf32>
    %42 = vector.shape_cast %41 : vector<16x128xf32> to vector<1x16x128xf32>
    %cst_11 = arith.constant dense<0.000000e+00> : vector<1xf32>
    %43 = vector.multi_reduction <add>, %42, %cst_11 [1, 2] : vector<1x16x128xf32> to vector<1xf32>
    %44 = vector.shape_cast %43 : vector<1xf32> to vector<1x1x1xf32>
    %45 = vector.extract %44[0, 0, 0] : f32 from vector<1x1x1xf32>
    %46 = arith.select %10, %32, %33 : vector<16x128xi1>, vector<16x128xf32>
    %47 = vector.shape_cast %46 : vector<16x128xf32> to vector<1x16x128xf32>
    %cst_12 = arith.constant dense<0.000000e+00> : vector<1xf32>
    %48 = vector.multi_reduction <add>, %47, %cst_12 [1, 2] : vector<1x16x128xf32> to vector<1xf32>
    %49 = vector.shape_cast %48 : vector<1xf32> to vector<1x1x1xf32>
    %50 = vector.extract %49[0, 0, 0] : f32 from vector<1x1x1xf32>
    %51 = tpu.iota {dimensions = array<i32: 2>} : vector<1x1x128xi32>
    %c0_i32 = arith.constant 0 : i32
    %52 = vector.broadcast %c0_i32 : i32 to vector<1x1x128xi32>
    %53 = arith.cmpi eq, %51, %52 : vector<1x1x128xi32>
    %cst_13 = arith.constant 0.000000e+00 : f32
    %54 = vector.broadcast %39 : f32 to vector<1x1x128xf32>
    %55 = vector.broadcast %cst_13 : f32 to vector<1x1x128xf32>
    %56 = arith.select %53, %54, %55 : vector<1x1x128xi1>, vector<1x1x128xf32>
    %c1_i32 = arith.constant 1 : i32
    %57 = vector.broadcast %c1_i32 : i32 to vector<1x1x128xi32>
    %58 = arith.cmpi eq, %51, %57 : vector<1x1x128xi32>
    %59 = vector.broadcast %45 : f32 to vector<1x1x128xf32>
    %60 = arith.select %58, %59, %56 : vector<1x1x128xi1>, vector<1x1x128xf32>
    %c2_i32 = arith.constant 2 : i32
    %61 = vector.broadcast %c2_i32 : i32 to vector<1x1x128xi32>
    %62 = arith.cmpi eq, %51, %61 : vector<1x1x128xi32>
    %63 = vector.broadcast %50 : f32 to vector<1x1x128xf32>
    %64 = arith.select %62, %63, %60 : vector<1x1x128xi1>, vector<1x1x128xf32>
    %c0_14 = arith.constant 0 : index
    %c0_15 = arith.constant 0 : index
    %c0_16 = arith.constant 0 : index
    %65 = vector.load %arg4[%c0_14, %c0_15, %c0_16] : memref<1x1x128xf32, #tpu.memory_space<vmem>>, vector<1x1x128xf32>
    tpu.vector_store %arg4[%c0_14, %c0_15, %c0_16], %64 {strides = array<i32>} : memref<1x1x128xf32, #tpu.memory_space<vmem>>, vector<1x1x128xf32>,
    return
  }
  func.func @transform_0(%arg0: i32, %arg1: memref<1xi32, #tpu.memory_space<smem>>) -> (i32, i32) {
    %c0_i32 = arith.constant 0 : i32
    %c0_i32_0 = arith.constant 0 : i32
    return %arg0, %c0_i32 : i32, i32
  }
  func.func @transform_1(%arg0: i32, %arg1: memref<1xi32, #tpu.memory_space<smem>>) -> (i32, i32) {
    %c0_i32 = arith.constant 0 : i32
    %c0_i32_0 = arith.constant 0 : i32
    return %arg0, %c0_i32 : i32, i32
  }
  func.func @transform_2(%arg0: i32, %arg1: memref<1xi32, #tpu.memory_space<smem>>) -> (i32, i32, i32) {
    %c0_i32 = arith.constant 0 : i32
    %c0_i32_0 = arith.constant 0 : i32
    %c0_i32_1 = arith.constant 0 : i32
    return %arg0, %c0_i32, %c0_i32_0 : i32, i32, i32
  }
}

</mosaic_0001>

<bundles_post_ra>
// kernel: tpu_custom_call.1
= control target key start
LH: loop header
LB: loop body
LE: loop exit
PB: predicated region body
PF: predicated region fallthrough
CT: control target
= control target key end

     0   :  { %9 = vsyncpa [#allocation5], 0  ;;  %s357_s0 = inlined_call_operand.<no memory space> [shape: s32[1], index: 0, kind: input, shape index: {}]   ;;  %s358_s1 = inlined_call_operand.hbm [shape: f32[16,128], index: 1, kind: input, shape index: {}]   ;;  %s359_s2 = inlined_call_operand.hbm [shape: f32[16,128], index: 2, kind: input, shape index: {}]   ;;  %s360_s3 = inlined_call_operand.hbm [shape: f32[1,1,128], index: 3, kind: output, shape index: {}]  }
   0x1   :  { %10 = vsyncpa [#allocation8], 0 }
   0x2   :  { %11 = vsyncpa [#allocation6], 0  ;;  %s266_s12 = smov [#allocation4]   ;;  %s194_s16 = scalar_lea.hbm %s358_s1, 256 }
   0x3   :  { %s17_s13 = sshll.u32 %s266_s12, 4  ;;  %p195_p0 = scmp.ne.s32.totalorder %s358_s1, %s194_s16  ;;  %s18_s13 = int_to_ptr.vmem [resolvable:$true] %s17_s13 }
   0x4   :  { %p198_p1 = scmp.lt.u32.totalorder %s194_s16, %s358_s1 }
   0x6   :  { %p200_p2 = pnand %p198_p1, %p195_p0 }
   0x8   :  { %203 = shalt.err (!%p200_p2)
}
   0x9   :  { %s204_s21 = scalar_lea.vmem %s18_s13, 256  ;;  %p209_p4 = scmp.lt.s32.totalorder %s18_s13, %s18_s13 }
   0xa   :  { %p205_p3 = scmp.ne.s32.totalorder %s18_s13, %s204_s21  ;;  %p210_p5 = scmp.lt.s32.totalorder %s204_s21, %s204_s21 }
   0xc   :  { %p211_p6 = por %p210_p5, %p209_p4 }
   0xe   :  { %p212_p7 = pnand %p211_p6, %p205_p3 }
  0x10   :  { %215 = shalt.err (!%p212_p7)
}
  0x11   :  { %s267_s22 = smov 128   ;;  %s268_s23 = smov 8  }
  0x12   :  { %23 = dma.hbm_to_vmem [thread:$0]  %s358_s1, 256, %s18_s13, [#allocation5], %s267_s22, %s267_s22, %s268_s23  }
  0x13   :  { %s269_s26 = smov [#allocation7]   ;;  %s216_s30 = scalar_lea.hbm %s359_s2, 256 }
  0x14   :  { %s29_s27 = sshll.u32 %s269_s26, 4  ;;  %p217_p8 = scmp.ne.s32.totalorder %s359_s2, %s216_s30  ;;  %s30_s27 = int_to_ptr.vmem [resolvable:$true] %s29_s27 }
  0x15   :  { %p220_p9 = scmp.lt.u32.totalorder %s216_s30, %s359_s2 }
  0x17   :  { %p222_p10 = pnand %p220_p9, %p217_p8 }
  0x19   :  { %225 = shalt.err (!%p222_p10)
}
  0x1a   :  { %s226_s8 = scalar_lea.vmem %s30_s27, 256  ;;  %p231_p12 = scmp.lt.s32.totalorder %s30_s27, %s30_s27 }
  0x1b   :  { %p227_p11 = scmp.ne.s32.totalorder %s30_s27, %s226_s8  ;;  %p232_p13 = scmp.lt.s32.totalorder %s226_s8, %s226_s8 }
  0x1d   :  { %p233_p0 = por %p232_p13, %p231_p12 }
  0x1f   :  { %p234_p1 = pnand %p233_p0, %p227_p11 }
  0x21   :  { %237 = shalt.err (!%p234_p1)
}
  0x22   :  { %35 = dma.hbm_to_vmem [thread:$0]  %s359_s2, 256, %s30_s27, [#allocation8], %s267_s22, %s267_s22, %s268_s23  }
  0x23   :  { %260 = dma.done.wait [#allocation5], 256  }
  0x24   :  { %261 = vsyncadd [#allocation5], 4294967040 }
  0x25   :  { %262 = dma.done.wait [#allocation8], 256  }
  0x26   :  { %263 = vsyncadd [#allocation8], 4294967040  ;;  %v59_v0 = vld [vmem:[#allocation4] sm:$0xff]  ;;  %v60_v1 = vld [vmem:[#allocation4 + $0x8] sm:$0xff]  ;;  %v42_v4 = vlaneseq  ;;  %v56_v16 = vstv %s357_s0  ;;  %s270_s12 = smov [#allocation9]  }
  0x27   :  { %v165_v2 = vmul.f32 -1.442695, %v59_v0  ;;  %v166_v3 = vmul.f32 -1.442695, %v60_v1  ;;  %v61_v17 = vld [vmem:[#allocation7] sm:$0xff]  ;;  %v62_v18 = vld [vmem:[#allocation7 + $0x8] sm:$0xff] }
  0x28   :  { %v43_v5 = vshrl.u32 %v42_v4, 7  ;;  %v315_v11 = vand.u32 127, %v42_v4  ;;  %v91_v43 = vsub.f32 1.0, %v61_v17  ;;  %v92_v46 = vsub.f32 1.0, %v62_v18  ;;  %s155_s13 = sshll.u32 %s270_s12, 4  ;;  %s156_s13 = int_to_ptr.vmem [resolvable:$true] %s155_s13 }
  0x29   :  { %178 = vpow2.f32 %v165_v2  ;;  %s238_s15 = scalar_lea.vmem %s156_s13, 16  ;;  %s242_s16 = scalar_lea.vmem %s156_s13, 32 }
  0x2a   :  { %180 = vpow2.f32 %v166_v3  ;;  %v44_v8 = vadd.s32 8, %v43_v5  ;;  %v48_v12 = vmul.u32 128, %v43_v5  ;;  %vm139_vm2 = vcmp.eq.s32.totalorder %v315_v11, 0  ;;  %p239_p2 = scmp.ne.s32.totalorder %s156_s13, %s238_s15  ;;  %p243_p3 = scmp.lt.s32.totalorder %s156_s13, %s156_s13 }
  0x2b   :  { %vm142_vm3 = vcmp.eq.s32.totalorder %v315_v11, 1  ;;  %vm145_vm4 = vcmp.eq.s32.totalorder %v315_v11, 2  ;;  %p244_p4 = scmp.lt.s32.totalorder %s242_s16, %s238_s15 }
  0x2c   :  { %v49_v13 = vmul.u32 128, %v44_v8  ;;  %v53_v14 = vadd.s32 %v48_v12, %v315_v11 }
  0x2d   :  { %p245_p5 = por %p244_p4, %p243_p3 }
  0x2e   :  { %v54_v15 = vadd.s32 %v49_v13, %v315_v11  ;;  %vm322_vm0 = vcmp.lt.s32.totalorder %v53_v14, %v56_v16 }
  0x2f   :  { %p246_p6 = pnand %p245_p5, %p239_p2 }
  0x30   :  { %vm326_vm1 = vcmp.lt.s32.totalorder %v54_v15, %v56_v16 }
  0x33   :  { %v179_v6 = vpop.eup %178 }
  0x34   :  { %v181_v7 = vpop.eup %180  ;;  %v69_v9 = vadd.f32 1.0, %v179_v6 }
  0x35   :  { %v70_v10 = vadd.f32 1.0, %v181_v7 }
  0x36   :  { %182 = vrcp.f32 %v69_v9 }
  0x37   :  { %184 = vrcp.f32 %v70_v10 }
  0x40   :  { %v183_v19 = vpop.eup %182 }
  0x41   :  { %v185_v22 = vpop.eup %184  ;;  %v99_v23 = vadd.f32 %v183_v19, %v61_v17  ;;  %v113_v24 = vmul.f32 %v183_v19, %v61_v17  ;;  %186 = vlog2.f32 %v183_v19  ;;  %v81_v25 = vsub.f32 1.0, %v183_v19 }
  0x42   :  { %v100_v26 = vadd.f32 %v185_v22, %v62_v18  ;;  %v114_v27 = vmul.f32 %v185_v22, %v62_v18  ;;  %188 = vlog2.f32 %v185_v22  ;;  %v82_v28 = vsub.f32 1.0, %v185_v22 }
  0x43   :  { %v101_v29 = vsel %vm322_vm0, %v99_v23, 0.0  ;;  %190 = vlog2.f32 %v81_v25  ;;  %v115_v31 = vsel %vm322_vm0, %v113_v24, 0.0 }
  0x44   :  { %v102_v30 = vsel %vm326_vm1, %v100_v26, 0.0  ;;  %v116_v32 = vsel %vm326_vm1, %v114_v27, 0.0  ;;  %192 = vlog2.f32 %v82_v28 }
  0x45   :  { %v103_v33 = vadd.f32 %v102_v30, %v101_v29  ;;  %v117_v34 = vadd.f32 %v116_v32, %v115_v31 }
  0x47   :  { %104 = vadd.xlane.f32.xlu0 %v103_v33 }
  0x4b   :  { %v187_v35 = vpop.eup %186  ;;  %118 = vadd.xlane.f32.xlu0 %v117_v34 }
  0x4c   :  { %v189_v36 = vpop.eup %188  ;;  %v76_v37 = vmul.f32 0.6931472, %v187_v35 }
  0x4d   :  { %v191_v38 = vpop.eup %190  ;;  %v78_v39 = vmul.f32 0.6931472, %v189_v36 }
  0x4e   :  { %v193_v40 = vpop.eup %192  ;;  %v79_v41 = vmax.f32 %v76_v37, -100.0  ;;  %v84_v42 = vmul.f32 0.6931472, %v191_v38 }
  0x4f   :  { %v80_v44 = vmax.f32 %v78_v39, -100.0  ;;  %v86_v45 = vmul.f32 0.6931472, %v193_v40 }
  0x50   :  { %v87_v47 = vmax.f32 %v84_v42, -100.0  ;;  %v89_v48 = vmul.f32 %v79_v41, %v61_v17 }
  0x51   :  { %v88_v49 = vmax.f32 %v86_v45, -100.0  ;;  %v90_v50 = vmul.f32 %v80_v44, %v62_v18 }
  0x52   :  { %v93_v51 = vmul.f32 %v91_v43, %v87_v47 }
  0x53   :  { %v94_v52 = vmul.f32 %v92_v46, %v88_v49 }
  0x54   :  { %v95_v53 = vadd.f32 %v93_v51, %v89_v48 }
  0x55   :  { %v96_v54 = vadd.f32 %v94_v52, %v90_v50 }
  0x56   :  { %v97_v55 = vsub.f32 0.0, %v95_v53 }
  0x57   :  { %v98_v56 = vsub.f32 0.0, %v96_v54 }
  0x58   :  { %v127_v57 = vsel %vm322_vm0, %v97_v55, 0.0 }
  0x59   :  { %v128_v58 = vsel %vm326_vm1, %v98_v56, 0.0 }
  0x5a   :  { %v129_v59 = vadd.f32 %v128_v58, %v127_v57 }
  0x5c   :  { %130 = vadd.xlane.f32.xlu1 %v129_v59 }
  0xd4   :  { %v105_v60 = vpop.xlane.xlu0 %104 }
  0xd5   :  { %v106_v61 = vrot.slane %v105_v60, 4 }
  0xd7   :  { %v107_v62 = vadd.f32 %v106_v61, %v105_v60 }
  0xd8   :  { %v119_v63 = vpop.xlane.xlu0 %118 }
  0xd9   :  { %v108_v0 = vrot.slane %v107_v62, 2  ;;  %v120_v1 = vrot.slane %v119_v63, 4 }
  0xdb   :  { %v121_v2 = vadd.f32 %v120_v1, %v119_v63  ;;  %v109_v3 = vadd.f32 %v108_v0, %v107_v62 }
  0xdd   :  { %v122_v4 = vrot.slane %v121_v2, 2  ;;  %v110_v5 = vrot.slane %v109_v3, 1 }
  0xdf   :  { %v123_v6 = vadd.f32 %v122_v4, %v121_v2  ;;  %v111_v7 = vadd.f32 %v110_v5, %v109_v3 }
  0xe1   :  { %167 = vpush %v111_v7  ;;  %v124_v8 = vrot.slane %v123_v6, 1 }
  0xe3   :  { %v125_v9 = vadd.f32 %v124_v8, %v123_v6 }
  0xe5   :  { %169 = vpush %v125_v9 }
  0xe9   :  { %v131_v10 = vpop.xlane.xlu1 %130 }
  0xea   :  { %v132_v12 = vrot.slane %v131_v10, 4 }
  0xec   :  { %v133_v13 = vadd.f32 %v132_v12, %v131_v10 }
  0xee   :  { %v134_v14 = vrot.slane %v133_v13, 2 }
  0xf0   :  { %v135_v15 = vadd.f32 %v134_v14, %v133_v13 }
  0xf2   :  { %v136_v16 = vrot.slane %v135_v15, 1 }
  0xf4   :  { %v137_v17 = vadd.f32 %v136_v16, %v135_v15 }
  0xf6   :  { %171 = vpush %v137_v17 }
 0x112   :  { %s168_s0 = spop %167 }
 0x113   :  { %v140_v18 = vstv %s168_s0 }
 0x114   :  { %v141_v19 = vsel %vm139_vm2, %v140_v18, 0.0 }
 0x116   :  { %s170_s11 = spop %169 }
 0x117   :  { %v143_v20 = vstv %s170_s11 }
 0x118   :  { %v144_v21 = vsel %vm142_vm3, %v143_v20, %v141_v19 }
 0x127   :  { %s172_s14 = spop %171 }
 0x128   :  { %v146_v22 = vstv %s172_s14 }
 0x129   :  { %v147_v23 = vsel %vm145_vm4, %v146_v22, %v144_v21 }
 0x12a   :  { %148 = vst [vmem:[#allocation9] sm:$0x1] %v147_v23 }
 0x12b   :  { %249 = shalt.err (!%p246_p6)
}
 0x12c   :  { %s250_s19 = scalar_lea.hbm %s360_s3, 16 }
 0x12d   :  { %p251_p7 = scmp.ne.s32.totalorder %s360_s3, %s250_s19  ;;  %p254_p8 = scmp.lt.u32.totalorder %s250_s19, %s360_s3 }
 0x12f   :  { %p256_p9 = pnand %p254_p8, %p251_p7 }
 0x131   :  { %259 = shalt.err (!%p256_p9)
}
 0x132   :  { %158 = dma.vmem_to_hbm [thread:$0]  %s156_s13, 16, %s360_s3, [#allocation6]  }
 0x133   :  { %264 = dma.done.wait [#allocation6], 16  }
 0x134   :  { %265 = vsyncadd [#allocation6], 4294967280 }
 0x135   :  { %162 = vsyncpa [#allocation5], 1 }
 0x136   :  { %163 = vsyncpa [#allocation8], 1 }
 0x137   :  { %164 = vsyncpa [#allocation6], 1 }

</bundles_post_ra>
